<compile_context>
chip_gen: v6e
topology: v6e:2x2x1
jax: 0.10.0
libtpu: 0.0.40
codegen_flags: <defaults>
</compile_context>

<pallas_src>
import jax
import jax.numpy as jnp
from jax.experimental import pallas as pl
from jax.experimental.pallas import tpu as pltpu


def _round_up(v, m):
    return (v + m - 1) // m * m


def _mlp4_kernel(x_ref, w1_ref, b1_ref, w2_ref, b2_ref,
                 w3_ref, b3_ref, w4_ref, b4_ref, o_ref):
    """One batch tile of the 4-layer MLP; all operands live in VMEM."""
    x = x_ref[...]                      # (TB, n_in) bf16

    b1 = b1_ref[...]                    # f32 biases, read once per grid step
    b2 = b2_ref[...]
    b3 = b3_ref[...]
    b4 = b4_ref[...]

    # layer 1: Linear + ReLU   (dropout p=0.0 -> identity)
    h = jnp.dot(x, w1_ref[...], preferred_element_type=jnp.float32) + b1
    h = jnp.maximum(h, 0.0).astype(jnp.bfloat16)

    # layer 2: Linear + ReLU   (dropout p=0.0 -> identity)
    h = jnp.dot(h, w2_ref[...], preferred_element_type=jnp.float32) + b2
    h = jnp.maximum(h, 0.0).astype(jnp.bfloat16)

    # layer 3: Linear + ReLU   (dropout p=0.0 -> identity)
    h = jnp.dot(h, w3_ref[...], preferred_element_type=jnp.float32) + b3
    h = jnp.maximum(h, 0.0).astype(jnp.bfloat16)

    # layer 4: Linear (no activation); lane-padded output, dense f32 store.
    out = jnp.dot(h, w4_ref[...], preferred_element_type=jnp.float32) + b4
    o_ref[...] = out.astype(o_ref.dtype)


def net_ann_4_no_bn_forward(x, params, *, block_batch=512, dropoff=0.0):
    """x: [batch, n_in] float32.  params: transposed weights [in,out], biases [1,out]."""
    assert dropoff == 0.0, "kernel implements p=0 / eval-mode dropout (identity)"

    w1, b1 = params["w1"], params["b1"]   # [n_in, neurons],    [1, neurons]
    w2, b2 = params["w2"], params["b2"]   # [neurons, neurons], [1, neurons]
    w3, b3 = params["w3"], params["b3"]   # [neurons, neurons], [1, neurons]
    w4, b4 = params["w4"], params["b4"]   # [neurons, n_out],   [1, n_out]

    batch, n_in = x.shape
    neurons = w1.shape[1]
    n_out = w4.shape[1]

    # --- batch tiling: TB multiple of 8, moderate size (fits v7x 32 MiB scoped VMEM) ---
    tb = min(_round_up(block_batch, 8), _round_up(batch, 8))
    padded_batch = _round_up(batch, tb)
    nb = padded_batch // tb

    # --- pad the output feature dim to a lane-dense multiple of 128 ---
    out_pad = _round_up(max(n_out, 128), 128)

    # --- cast inputs/weights to bf16 (f32 accumulation in-kernel), pad as needed ---
    x_p = x.astype(jnp.bfloat16)
    if padded_batch != batch:
        x_p = jnp.pad(x_p, ((0, padded_batch - batch), (0, 0)))

    w1b = w1.astype(jnp.bfloat16)
    w2b = w2.astype(jnp.bfloat16)
    w3b = w3.astype(jnp.bfloat16)
    w4b = jnp.pad(w4, ((0, 0), (0, out_pad - n_out))).astype(jnp.bfloat16)
    b4p = jnp.pad(b4, ((0, 0), (0, out_pad - n_out)))

    resident = lambda shape: pl.BlockSpec(shape, lambda i: (0, 0))

    out = pl.pallas_call(
        _mlp4_kernel,
        out_shape=jax.ShapeDtypeStruct((padded_batch, out_pad), jnp.float32),
        grid_spec=pltpu.PrefetchScalarGridSpec(
            num_scalar_prefetch=0,
            grid=(nb,),
            in_specs=[
                pl.BlockSpec((tb, n_in), lambda i: (i, 0)),      # x tile, pipelined
                resident((n_in, neurons)), resident((1, neurons)),
                resident((neurons, neurons)), resident((1, neurons)),
                resident((neurons, neurons)), resident((1, neurons)),
                resident((neurons, out_pad)), resident((1, out_pad)),
            ],
            out_specs=pl.BlockSpec((tb, out_pad), lambda i: (i, 0)),
        ),
        compiler_params=pltpu.CompilerParams(
            dimension_semantics=("parallel",),      # lets v7x shard grid across its 2 TCs
            vmem_limit_bytes=64 * 1024 * 1024,
        ),
    )(x_p, w1b, b1, w2b, b2, w3b, b3, w4b, b4p)

    return out[:batch, :n_out]


def init_params(key, n_in, n_out, neurons=128):
    """Mirror nn.Linear default init U(-1/sqrt(fan_in), 1/sqrt(fan_in)); weights stored [in,out]."""
    ks = jax.random.split(key, 8)

    def linear(kw, kb, fan_in, fan_out):
        bound = 1.0 / jnp.sqrt(jnp.float32(fan_in))
        w = jax.random.uniform(kw, (fan_in, fan_out), jnp.float32, -bound, bound)
        b = jax.random.uniform(kb, (1, fan_out), jnp.float32, -bound, bound)
        return w, b

    w1, b1 = linear(ks[0], ks[1], n_in, neurons)
    w2, b2 = linear(ks[2], ks[3], neurons, neurons)
    w3, b3 = linear(ks[4], ks[5], neurons, neurons)
    w4, b4 = linear(ks[6], ks[7], neurons, n_out)
    return {"w1": w1, "b1": b1, "w2": w2, "b2": b2,
            "w3": w3, "b3": b3, "w4": w4, "b4": b4}


def _ref_forward_bf16(x, params):
    """Pure-JAX reference with the same bf16 quantization / f32 accumulation."""
    bf = lambda a: a.astype(jnp.bfloat16)
    h = jnp.dot(bf(x), bf(params["w1"]), preferred_element_type=jnp.float32) + params["b1"]
    h = jnp.maximum(h, 0.0)
    h = jnp.dot(bf(h), bf(params["w2"]), preferred_element_type=jnp.float32) + params["b2"]
    h = jnp.maximum(h, 0.0)
    h = jnp.dot(bf(h), bf(params["w3"]), preferred_element_type=jnp.float32) + params["b3"]
    h = jnp.maximum(h, 0.0)
    return jnp.dot(bf(h), bf(params["w4"]), preferred_element_type=jnp.float32) + params["b4"]


if __name__ == "__main__":
    key = jax.random.PRNGKey(0)
    k_x, k_p = jax.random.split(key)

    batch, n_in, n_out, neurons = 256, 32, 16, 128
    x = jax.random.normal(k_x, (batch, n_in), dtype=jnp.float32)
    params = init_params(k_p, n_in, n_out, neurons)

    # block_batch=128 -> grid of 2 steps even at this small demo batch;
    # real workloads should pass batch >= a few hundred rows and block_batch ~512-2048.
    out = net_ann_4_no_bn_forward(x, params, block_batch=128)
    out = jax.block_until_ready(out)

    ref = _ref_forward_bf16(x, params)
    assert out.shape == (batch, n_out)
    assert jnp.allclose(out, ref, atol=1e-2, rtol=1e-2), float(jnp.max(jnp.abs(out - ref)))

    print("KERNEL_OK")
</pallas_src>

<mosaic_0001>
module attributes {stable_mosaic.version = 11 : i64} {
  func.func @_mlp4_kernel(%arg0: i32, %arg1: memref<128x32xbf16, #tpu.memory_space<vmem>>, %arg2: memref<32x128xbf16, #tpu.memory_space<vmem>>, %arg3: memref<1x128xf32, #tpu.memory_space<vmem>>, %arg4: memref<128x128xbf16, #tpu.memory_space<vmem>>, %arg5: memref<1x128xf32, #tpu.memory_space<vmem>>, %arg6: memref<128x128xbf16, #tpu.memory_space<vmem>>, %arg7: memref<1x128xf32, #tpu.memory_space<vmem>>, %arg8: memref<128x128xbf16, #tpu.memory_space<vmem>>, %arg9: memref<1x128xf32, #tpu.memory_space<vmem>>, %arg10: memref<128x128xf32, #tpu.memory_space<vmem>>) attributes {dimension_semantics = [#tpu.dimension_semantics<parallel>], iteration_bounds = array<i64: 2>, scalar_prefetch = 0 : i64, scratch_operands = 0 : i64, tpu.core_type = #tpu.core_type<tc>, window_params = [{transform_indices = @transform_0, window_bounds = array<i64: 128, 32>}, {pipeline_mode = #tpu.pipeline_mode<synchronous>, transform_indices = @transform_1, window_bounds = array<i64: 32, 128>}, {pipeline_mode = #tpu.pipeline_mode<synchronous>, transform_indices = @transform_2, window_bounds = array<i64: 1, 128>}, {pipeline_mode = #tpu.pipeline_mode<synchronous>, transform_indices = @transform_3, window_bounds = array<i64: 128, 128>}, {pipeline_mode = #tpu.pipeline_mode<synchronous>, transform_indices = @transform_4, window_bounds = array<i64: 1, 128>}, {pipeline_mode = #tpu.pipeline_mode<synchronous>, transform_indices = @transform_5, window_bounds = array<i64: 128, 128>}, {pipeline_mode = #tpu.pipeline_mode<synchronous>, transform_indices = @transform_6, window_bounds = array<i64: 1, 128>}, {pipeline_mode = #tpu.pipeline_mode<synchronous>, transform_indices = @transform_7, window_bounds = array<i64: 128, 128>}, {pipeline_mode = #tpu.pipeline_mode<synchronous>, transform_indices = @transform_8, window_bounds = array<i64: 1, 128>}, {transform_indices = @transform_9, window_bounds = array<i64: 128, 128>}]} {
    %c0 = arith.constant 0 : index
    %c0_0 = arith.constant 0 : index
    %0 = vector.load %arg1[%c0, %c0_0] : memref<128x32xbf16, #tpu.memory_space<vmem>>, vector<128x32xbf16>
    %c0_1 = arith.constant 0 : index
    %c0_2 = arith.constant 0 : index
    %1 = vector.load %arg3[%c0_1, %c0_2] : memref<1x128xf32, #tpu.memory_space<vmem>>, vector<1x128xf32>
    %c0_3 = arith.constant 0 : index
    %c0_4 = arith.constant 0 : index
    %2 = vector.load %arg5[%c0_3, %c0_4] : memref<1x128xf32, #tpu.memory_space<vmem>>, vector<1x128xf32>
    %c0_5 = arith.constant 0 : index
    %c0_6 = arith.constant 0 : index
    %3 = vector.load %arg7[%c0_5, %c0_6] : memref<1x128xf32, #tpu.memory_space<vmem>>, vector<1x128xf32>
    %c0_7 = arith.constant 0 : index
    %c0_8 = arith.constant 0 : index
    %4 = vector.load %arg9[%c0_7, %c0_8] : memref<1x128xf32, #tpu.memory_space<vmem>>, vector<1x128xf32>
    %c0_9 = arith.constant 0 : index
    %c0_10 = arith.constant 0 : index
    %5 = vector.load %arg2[%c0_9, %c0_10] : memref<32x128xbf16, #tpu.memory_space<vmem>>, vector<32x128xbf16>
    %cst = arith.constant dense<0.000000e+00> : vector<128x128xf32>
    %6 = tpu.matmul %0, %5, %cst {dimension_numbers = #tpu.dot_dimension_numbers<[1], [0], [0], [1], [0, 0, 1, 1], [], []>} : vector<128x32xbf16>, vector<32x128xbf16>, vector<128x128xf32> -> vector<128x128xf32>
    %7 = vector.broadcast %1 : vector<1x128xf32> to vector<128x128xf32>
    %8 = arith.addf %6, %7 : vector<128x128xf32>
    %cst_11 = arith.constant 0.000000e+00 : f32
    %9 = vector.broadcast %cst_11 : f32 to vector<128x128xf32>
    %10 = arith.maximumf %8, %9 : vector<128x128xf32>
    %11 = arith.truncf %10 : vector<128x128xf32> to vector<128x128xbf16>
    %c0_12 = arith.constant 0 : index
    %c0_13 = arith.constant 0 : index
    %12 = vector.load %arg4[%c0_12, %c0_13] : memref<128x128xbf16, #tpu.memory_space<vmem>>, vector<128x128xbf16>
    %cst_14 = arith.constant dense<0.000000e+00> : vector<128x128xf32>
    %13 = tpu.matmul %11, %12, %cst_14 {dimension_numbers = #tpu.dot_dimension_numbers<[1], [0], [0], [1], [0, 0, 1, 1], [], []>} : vector<128x128xbf16>, vector<128x128xbf16>, vector<128x128xf32> -> vector<128x128xf32>
    %14 = vector.broadcast %2 : vector<1x128xf32> to vector<128x128xf32>
    %15 = arith.addf %13, %14 : vector<128x128xf32>
    %cst_15 = arith.constant 0.000000e+00 : f32
    %16 = vector.broadcast %cst_15 : f32 to vector<128x128xf32>
    %17 = arith.maximumf %15, %16 : vector<128x128xf32>
    %18 = arith.truncf %17 : vector<128x128xf32> to vector<128x128xbf16>
    %c0_16 = arith.constant 0 : index
    %c0_17 = arith.constant 0 : index
    %19 = vector.load %arg6[%c0_16, %c0_17] : memref<128x128xbf16, #tpu.memory_space<vmem>>, vector<128x128xbf16>
    %cst_18 = arith.constant dense<0.000000e+00> : vector<128x128xf32>
    %20 = tpu.matmul %18, %19, %cst_18 {dimension_numbers = #tpu.dot_dimension_numbers<[1], [0], [0], [1], [0, 0, 1, 1], [], []>} : vector<128x128xbf16>, vector<128x128xbf16>, vector<128x128xf32> -> vector<128x128xf32>
    %21 = vector.broadcast %3 : vector<1x128xf32> to vector<128x128xf32>
    %22 = arith.addf %20, %21 : vector<128x128xf32>
    %cst_19 = arith.constant 0.000000e+00 : f32
    %23 = vector.broadcast %cst_19 : f32 to vector<128x128xf32>
    %24 = arith.maximumf %22, %23 : vector<128x128xf32>
    %25 = arith.truncf %24 : vector<128x128xf32> to vector<128x128xbf16>
    %c0_20 = arith.constant 0 : index
    %c0_21 = arith.constant 0 : index
    %26 = vector.load %arg8[%c0_20, %c0_21] : memref<128x128xbf16, #tpu.memory_space<vmem>>, vector<128x128xbf16>
    %cst_22 = arith.constant dense<0.000000e+00> : vector<128x128xf32>
    %27 = tpu.matmul %25, %26, %cst_22 {dimension_numbers = #tpu.dot_dimension_numbers<[1], [0], [0], [1], [0, 0, 1, 1], [], []>} : vector<128x128xbf16>, vector<128x128xbf16>, vector<128x128xf32> -> vector<128x128xf32>
    %28 = vector.broadcast %4 : vector<1x128xf32> to vector<128x128xf32>
    %29 = arith.addf %27, %28 : vector<128x128xf32>
    %c0_23 = arith.constant 0 : index
    %c0_24 = arith.constant 0 : index
    %30 = vector.load %arg10[%c0_23, %c0_24] : memref<128x128xf32, #tpu.memory_space<vmem>>, vector<128x128xf32>
    tpu.vector_store %arg10[%c0_23, %c0_24], %29 {strides = array<i32>} : memref<128x128xf32, #tpu.memory_space<vmem>>, vector<128x128xf32>,
    return
  }
  func.func @transform_0(%arg0: i32) -> (i32, i32) {
    %c0_i32 = arith.constant 0 : i32
    %c0_i32_0 = arith.constant 0 : i32
    return %arg0, %c0_i32 : i32, i32
  }
  func.func @transform_1(%arg0: i32) -> (i32, i32) {
    %c0_i32 = arith.constant 0 : i32
    %c0_i32_0 = arith.constant 0 : i32
    %c0_i32_1 = arith.constant 0 : i32
    return %c0_i32, %c0_i32_0 : i32, i32
  }
  func.func @transform_2(%arg0: i32) -> (i32, i32) {
    %c0_i32 = arith.constant 0 : i32
    %c0_i32_0 = arith.constant 0 : i32
    %c0_i32_1 = arith.constant 0 : i32
    return %c0_i32, %c0_i32_0 : i32, i32
  }
  func.func @transform_3(%arg0: i32) -> (i32, i32) {
    %c0_i32 = arith.constant 0 : i32
    %c0_i32_0 = arith.constant 0 : i32
    %c0_i32_1 = arith.constant 0 : i32
    return %c0_i32, %c0_i32_0 : i32, i32
  }
  func.func @transform_4(%arg0: i32) -> (i32, i32) {
    %c0_i32 = arith.constant 0 : i32
    %c0_i32_0 = arith.constant 0 : i32
    %c0_i32_1 = arith.constant 0 : i32
    return %c0_i32, %c0_i32_0 : i32, i32
  }
  func.func @transform_5(%arg0: i32) -> (i32, i32) {
    %c0_i32 = arith.constant 0 : i32
    %c0_i32_0 = arith.constant 0 : i32
    %c0_i32_1 = arith.constant 0 : i32
    return %c0_i32, %c0_i32_0 : i32, i32
  }
  func.func @transform_6(%arg0: i32) -> (i32, i32) {
    %c0_i32 = arith.constant 0 : i32
    %c0_i32_0 = arith.constant 0 : i32
    %c0_i32_1 = arith.constant 0 : i32
    return %c0_i32, %c0_i32_0 : i32, i32
  }
  func.func @transform_7(%arg0: i32) -> (i32, i32) {
    %c0_i32 = arith.constant 0 : i32
    %c0_i32_0 = arith.constant 0 : i32
    %c0_i32_1 = arith.constant 0 : i32
    return %c0_i32, %c0_i32_0 : i32, i32
  }
  func.func @transform_8(%arg0: i32) -> (i32, i32) {
    %c0_i32 = arith.constant 0 : i32
    %c0_i32_0 = arith.constant 0 : i32
    %c0_i32_1 = arith.constant 0 : i32
    return %c0_i32, %c0_i32_0 : i32, i32
  }
  func.func @transform_9(%arg0: i32) -> (i32, i32) {
    %c0_i32 = arith.constant 0 : i32
    %c0_i32_0 = arith.constant 0 : i32
    return %arg0, %c0_i32 : i32, i32
  }
}

</mosaic_0001>

<bundles_post_ra>
// kernel: tpu_custom_call.1
= control target key start
LH: loop header
LB: loop body
LE: loop exit
PB: predicated region body
PF: predicated region fallthrough
CT: control target
= control target key end

     0   :  { %14 = vsyncpa [#allocation3], 0  ;;  %s1950_s0 = inlined_call_operand.vmem [shape: bf16[256,32], index: 0, kind: input, shape index: {}]   ;;  %s1951_s1 = inlined_call_operand.vmem [shape: bf16[32,128], index: 1, kind: input, shape index: {}]   ;;  %s1952_s2 = inlined_call_operand.vmem [shape: f32[1,128], index: 2, kind: input, shape index: {}]   ;;  %s1953_s3 = inlined_call_operand.vmem [shape: bf16[128,128], index: 3, kind: input, shape index: {}]   ;;  %s1954_s4 = inlined_call_operand.vmem [shape: f32[1,128], index: 4, kind: input, shape index: {}]   ;;  %s1955_s5 = inlined_call_operand.vmem [shape: bf16[128,128], index: 5, kind: input, shape index: {}]   ;;  %s1956_s6 = inlined_call_operand.vmem [shape: f32[1,128], index: 6, kind: input, shape index: {}]   ;;  %s1957_s7 = inlined_call_operand.hbm [shape: bf16[128,128], index: 7, kind: input, shape index: {}]   ;;  %s1958_s8 = inlined_call_operand.vmem [shape: f32[1,128], index: 8, kind: input, shape index: {}]   ;;  %s1959_s9 = inlined_call_operand.hbm [shape: f32[256,128], index: 9, kind: output, shape index: {}]  }
   0x1   :  { %15 = vsyncpa [#allocation4], 0 }
   0x2   :  { %17 = vsyncpa [#allocation4 + $0x1], 0  ;;  %s1718_s30 = smov 0   ;;  %s1720_s10 = smov 0  }
   0x3   :  { %s1722_s11 = smov 0   ;;  %s1724_s12 = smov 0  }
   0x4 LB: > { %s1739_s13 = sadd.s32 4294967295, %s1660_s12   ;;  %s1231_s14 = sadd.s32 4294967294, %s1660_s12   ;;  %s1660_s12 = sphi %s1724_s12, %s1967_s12   ;;  %s1656_s11 = sphi %s1722_s11, %s1966_s11   ;;  %s1652_s10 = sphi %s1720_s10, %s1965_s10   ;;  %s1648_s30 = sphi %s1718_s30, %s1964_s30  }
   0x5   : > { %s1743_s15 = sadd.s32 1, %s1660_s12   ;;  %s224_s16 = sadd.s32 1, %s1656_s11 }
   0x6   : > { %s221_s17 = ssub.s32 %s1660_s12, %s1743_s15  ;;  %p234_p0 = scmp.ne.s32.totalorder %s1656_s11, %s1652_s10 }
   0x7   : > { %p222_p1 = scmp.eq.s32.totalorder %s221_s17, 0  ;;  %p235_p2 = scmp.eq.s32.totalorder %s1739_s13, 1 }
   0x8   : > { %p240_p3 = scmp.ne.s32.totalorder %s1652_s10, %s1648_s30  ;;  %p241_p4 = scmp.eq.s32.totalorder %s1231_s14, 1 }
   0x9   : > { %s1754_s18 = scalar_select %p222_p1, %s1656_s11, %s224_s16  }
   0xa   : > { %p1756_p5 = por %p235_p2, %p234_p0  ;;  %p1760_p6 = por %p241_p4, %p240_p3 }
   0xb   : > { %p1232_p7 = scmp.ge.s32.totalorder %s1660_s12, 1  ;;  %p248_p8 = scmp.lt.s32.totalorder %s1660_s12, 3 }
   0xc   : > { %s1961_s20 = scalar_select %p1760_p6, 1, 0 }
   0xd   : > { %p1496_p9 = scmp.eq.s32.totalorder %s1739_s13, 0  ;;  %p1767_p10 = pnand %p1232_p7, %p248_p8 }
   0xe   : > { %s1662_s22 = smov [#allocation2]  }
   0xf   : > { %s278_s23 = sshll.u32 %s1662_s22, 4  ;;  %p1488_p11 = pneg %p1767_p10  ;;  %s279_s23 = int_to_ptr.vmem [resolvable:$true] %s278_s23 }
  0x10   : > { %s1581_s24 = scalar_lea.vmem %s279_s23, 1024  ;;  %p1589_p3 = scmp.lt.s32.totalorder %s279_s23, %s279_s23 }
  0x11   : > { %p1489_p12 = pnand %p1496_p9, %p1488_p11  ;;  %p1582_p0 = scmp.ne.s32.totalorder %s279_s23, %s1581_s24 }
  0x12   : > { %p1590_p4 = scmp.lt.s32.totalorder %s1581_s24, %s1581_s24 }
  0x13   : > { %p1572_p13 = pneg %p1489_p12 }
  0x14   : > { %p1591_p6 = por %p1590_p4, %p1589_p3 }
  0x15   : > { %p1584_p1 = pnand %p1582_p0, %p1572_p13 }
  0x17   : > { %p1585_p2 = pneg %p1584_p1 }
  0x19   : > { %p1592_p7 = pnand %p1591_p6, %p1585_p2 }
  0x1b   : > { %1595 = shalt.err (!%p1592_p7)
}
  0x1c   : > { %s1663_s25 = smov 64   ;;  %s1664_s26 = smov 4  }
  0x1d   : > { %1491 = dma.hbm_to_vmem [thread:$0]  (!%p1489_p12), %s1957_s7, 1024, %s279_s23, [#allocation3], %s1663_s25, %s1663_s25, %s1664_s26  }
  0x1e   : > { %306 = sbr.rel (%p1767_p10) target bundleno = 902 (0x386), region = 56 }
  0x23   : > { %1639 = dma.done.wait (%p1496_p9), [#allocation3], 1024  }
  0x24   : > { %1641 = vsyncadd (%p1496_p9), [#allocation3], 4294966272  ;;  %s1238_s29 = sshll.u32 %s1739_s13, 4  ;;  %v1536_v0 = vld [vmem:[%s1951_s1 + $0x8] sm:$0xff]   ;;  %v1537_v1 = vld [vmem:[%s1951_s1] sm:$0xff]   ;;  %vm432_vm0 = vcmask 261120  }
  0x25   : > { %p343_p8 = scmp.lt.s32.totalorder %s1238_s29, 31  ;;  %1350 = vmatprep.subr.bf16.mxu0 %v1536_v0  ;;  %v1546_v5 = vld [vmem:[%s1953_s3 + $0x38] sm:$0xff]   ;;  %v1547_v6 = vld [vmem:[%s1953_s3 + $0x30] sm:$0xff]   ;;  %v1548_v9 = vld [vmem:[%s1953_s3 + $0x28] sm:$0xff]   ;;  %s1291_s23 = sshll.u32 %s1739_s13, 11 }
  0x26   : > { %1351 = vmatpush3.bf16.msra.mxu0 %v1536_v0  ;;  %1370 = vmatprep.subr.bf16.mxu1 %v1546_v5  ;;  %v1549_v10 = vld [vmem:[%s1953_s3 + $0x20] sm:$0xff]   ;;  %v1550_v12 = vld [vmem:[%s1953_s3 + $0x18] sm:$0xff]   ;;  %v1551_v15 = vld [vmem:[%s1953_s3 + $0x10] sm:$0xff]   ;;  %s1902_s26 = scalar_lea.hbm %s1959_s9, %s1291_s23  ;;  %s1665_s28 = smov [#allocation5]  }
  0x27   : > { %s1969_s29 = smov (!%p343_p8, %s1238_s29), 31  ;;  %1352 = vmatprep.subr.bf16.mxu0 %v1537_v1  ;;  %1371 = vmatpush3.bf16.msra.mxu1 %v1546_v5  ;;  %v1552_v16 = vld [vmem:[%s1953_s3 + $0x8] sm:$0xff]   ;;  %v1553_v17 = vld [vmem:[%s1953_s3] sm:$0xff]   ;;  %v1554_v18 = vld [vmem:[%s1955_s5 + $0x38] sm:$0xff]  }
  0x28   : > { %s1239_s14 = sshll.u32 %s1969_s29, 2  ;;  %1372 = vmatprep.subr.bf16.mxu1 %v1547_v6  ;;  %v1555_v19 = vld [vmem:[%s1955_s5 + $0x30] sm:$0xff]   ;;  %v1556_v20 = vld [vmem:[%s1955_s5 + $0x28] sm:$0xff]   ;;  %v1557_v21 = vld [vmem:[%s1955_s5 + $0x20] sm:$0xff]   ;;  %s339_s29 = sand.u32 1, %s1652_s10  }
  0x29   : > { %s1788_s22 = scalar_lea.vmem %s1950_s0, %s1239_s14  ;;  %v1558_v22 = vld [vmem:[%s1955_s5 + $0x18] sm:$0xff]   ;;  %v1240_v25 = vld [vmem:[%s1952_s2] ss:$0 sm:$0xff]  ;;  %s1237_s14 = sshll.u32 %s339_s29, 7 }
  0x2a   : > { %v1538_v2 = vld [vmem:[%s1788_s22] sm:$0xff]   ;;  %v1539_v3 = vld [vmem:[%s1788_s22 + $0x8] sm:$0xff]   ;;  %1353 = vmatpush3.bf16.msra.mxu0 %v1537_v1  ;;  %v1540_v4 = vld [vmem:[%s1788_s22 + $0x10] sm:$0xff]   ;;  %s1881_s17 = scalar_lea.vmem [#allocation5], %s1237_s14  ;;  %s1910_s13 = scalar_lea.sflag [#allocation4], %s339_s29 }
  0x2b   : > { %1354 = vmatprep.mubr.msk.bf16.mxu0 %vm432_vm0, %v1538_v2  ;;  %v1541_v7 = vld [vmem:[%s1788_s22 + $0x18] sm:$0xff]   ;;  %v1542_v8 = vld [vmem:[%s1788_s22 + $0x20] sm:$0xff]   ;;  %1373 = vmatpush3.bf16.msra.mxu1 %v1547_v6  ;;  %v1543_v11 = vld [vmem:[%s1788_s22 + $0x28] sm:$0xff]   ;;  %s1157_s24 = sshll.u32 %s1881_s17, 4  ;;  %s1600_s14 = sshll.u32 %s1665_s28, 4  ;;  %s1904_s24 = int_to_ptr.vmem [resolvable:$true] %s1157_s24  ;;  %s1601_s14 = int_to_ptr.vmem [resolvable:$false] %s1600_s14 }
  0x2c   : > { %1374 = vmatprep.subr.bf16.mxu1 %v1548_v9  ;;  %v1544_v13 = vld [vmem:[%s1788_s22 + $0x30] sm:$0xff]   ;;  %v1545_v14 = vld [vmem:[%s1788_s22 + $0x38] sm:$0xff]   ;;  %1402 = vmatprep.subr.bf16.mxu0 %v1554_v18  ;;  %s1596_s27 = scalar_lea.vmem %s1904_s24, 2048  ;;  %s1602_s22 = scalar_lea.vmem %s1601_s14, 4096 }
  0x2d   : > { %1355 = vmatmul.mubr.msk.bf16.vlgmr.msra.gmra.mxu0 %vm432_vm0, %v1539_v3  ;;  %p1597_p6 = scmp.ne.s32.totalorder %s1904_s24, %s1596_s27  ;;  %p1603_p11 = scmp.lt.s32.totalorder %s1904_s24, %s1601_s14 }
  0x2e   : > { %1358 = vmatprep.mubr.msk.bf16.mxu0 %vm432_vm0, %v1540_v4  ;;  %1403 = vmatpush3.bf16.msra.mxu0 %v1554_v18  ;;  %v1561_v18 = vld [vmem:[%s1955_s5] sm:$0xff]   ;;  %p1604_p12 = scmp.lt.s32.totalorder %s1602_s22, %s1596_s27 }
  0x2f   : > { %1375 = vmatpush3.bf16.msra.mxu1 %v1548_v9  ;;  %1404 = vmatprep.subr.bf16.mxu0 %v1555_v19  ;;  %p1598_p9 = pnand %p1597_p6, %p1756_p5 }
  0x30   : > { %1376 = vmatprep.subr.bf16.mxu1 %v1549_v10  ;;  %p1605_p13 = por %p1604_p12, %p1603_p11 }
  0x31   : > { %p1599_p10 = pneg %p1598_p9 }
  0x32   : > { %1405 = vmatpush3.bf16.msra.mxu0 %v1555_v19  ;;  %v1562_v19 = vld [vmem:[#allocation2 + $0x38] sm:$0xff]  }
  0x33   : > { %1377 = vmatpush3.bf16.msra.mxu1 %v1549_v10  ;;  %1406 = vmatprep.subr.bf16.mxu0 %v1556_v20  ;;  %p1606_p0 = pnand %p1605_p13, %p1599_p10 }
  0x34   : > { %1378 = vmatprep.subr.bf16.mxu1 %v1550_v12 }
  0x35   : > { %1359 = vmatmul.mubr.msk.bf16.gmra.mxu0 %vm432_vm0, %v1541_v7 }
  0x36   : > { %1362 = vmatprep.mubr.msk.bf16.mxu0 %vm432_vm0, %v1542_v8  ;;  %1407 = vmatpush3.bf16.msra.mxu0 %v1556_v20  ;;  %v1563_v20 = vld [vmem:[#allocation2 + $0x30] sm:$0xff]  }
  0x37   : > { %1379 = vmatpush3.bf16.msra.mxu1 %v1550_v12  ;;  %1408 = vmatprep.subr.bf16.mxu0 %v1557_v21 }
  0x38   : > { %1380 = vmatprep.subr.bf16.mxu1 %v1551_v15 }
  0x3a   : > { %1409 = vmatpush3.bf16.msra.mxu0 %v1557_v21  ;;  %v1564_v21 = vld [vmem:[#allocation2 + $0x28] sm:$0xff]  }
  0x3b   : > { %1381 = vmatpush3.bf16.msra.mxu1 %v1551_v15  ;;  %1410 = vmatprep.subr.bf16.mxu0 %v1558_v22 }
  0x3c   : > { %1382 = vmatprep.subr.bf16.mxu1 %v1552_v16 }
  0x3d   : > { %1363 = vmatmul.mubr.msk.bf16.gmra.mxu0 %vm432_vm0, %v1543_v11 }
  0x3e   : > { %1366 = vmatprep.mubr.msk.bf16.mxu0 %vm432_vm0, %v1544_v13  ;;  %1411 = vmatpush3.bf16.msra.mxu0 %v1558_v22  ;;  %v1565_v22 = vld [vmem:[#allocation2 + $0x20] sm:$0xff]  }
  0x3f   : > { %1383 = vmatpush3.bf16.msra.mxu1 %v1552_v16  ;;  %v1559_v16 = vld [vmem:[%s1955_s5 + $0x10] sm:$0xff]  }
  0x40   : > { %1384 = vmatprep.subr.bf16.mxu1 %v1553_v17  ;;  %1412 = vmatprep.subr.bf16.mxu0 %v1559_v16 }
  0x42   : > { %1413 = vmatpush3.bf16.msra.mxu0 %v1559_v16 }
  0x43   : > { %1385 = vmatpush3.bf16.msra.mxu1 %v1553_v17  ;;  %v1560_v17 = vld [vmem:[%s1955_s5 + $0x8] sm:$0xff]  }
  0x44   : > { %1414 = vmatprep.subr.bf16.mxu0 %v1560_v17  ;;  %1466 = vmatprep.subr.bf16.mxu1 %v1562_v19 }
  0x45   : > { %1367 = vmatmul.mubr.msk.bf16.gmra.mxu0 %vm432_vm0, %v1545_v14 }
  0x46   : > { %1415 = vmatpush3.bf16.msra.mxu0 %v1560_v17  ;;  %v1567_v17 = vld [vmem:[#allocation2 + $0x10] sm:$0xff]  }
  0x47   : > { %1416 = vmatprep.subr.bf16.mxu0 %v1561_v18 }
  0x4a   : > { %1417 = vmatpush3.bf16.msra.mxu0 %v1561_v18  ;;  %v1568_v18 = vld [vmem:[#allocation2 + $0x8] sm:$0xff]  }
  0x4b   : > { %1434 = vmatprep.subr.bf16.mxu0 %v1562_v19 }
  0xed   : > { %v1356_v23 = vpop.f32.mrf.mxu0 }
  0xee   : > { %v500_v29 = vadd.f32 %v1356_v23, %v1240_v25  ;;  %v1863_v23 = vld [vmem:[#allocation2 + $0x18] sm:$0xff]  }
  0xef   : > { %v491_v24 = vpop.f32.mrf.mxu0 }
  0xf0   : > { %v492_v27 = vadd.f32 %v1240_v25, %v491_v24  ;;  %v556_v36 = vmax.f32 %v500_v29, 0.0 }
  0xf1   : > { %v1357_v26 = vpop.f32.mrf.mxu0 }
  0xf2   : > { %v503_v28 = vadd.f32 %v1357_v26, %v1240_v25  ;;  %v554_v34 = vmax.f32 %v492_v27, 0.0  ;;  %v1259_v26 = vld [vmem:[%s1954_s4] ss:$0 sm:$0xff] }
  0xf3   : > { %v494_v30 = vpop.f32.mrf.mxu0 }
  0xf4   : > { %v495_v31 = vadd.f32 %v1240_v25, %v494_v30  ;;  %v557_v32 = vmax.f32 %v503_v28, 0.0 }
  0xf5   : > { %v1360_v33 = vpop.f32.mrf.mxu0 }
  0xf6   : > { %v555_v35 = vmax.f32 %v495_v31, 0.0  ;;  %v571_v39 = vpack.c.bf16 %v557_v32, %v556_v36  ;;  %v516_v43 = vadd.f32 %v1360_v33, %v1240_v25 }
  0xf7   : > { %v507_v37 = vpop.f32.mrf.mxu0 }
  0xf8   : > { %v570_v38 = vpack.c.bf16 %v555_v35, %v554_v34  ;;  %v508_v41 = vadd.f32 %v1240_v25, %v507_v37  ;;  %v560_v50 = vmax.f32 %v516_v43, 0.0 }
  0xf9   : > { %v1361_v40 = vpop.f32.mrf.mxu0 }
  0xfa   : > { %v519_v42 = vadd.f32 %v1361_v40, %v1240_v25  ;;  %1386 = vmatprep.mubr.bf16.mxu1 %v570_v38  ;;  %v558_v48 = vmax.f32 %v508_v41, 0.0 }
  0xfb   : > { %v510_v44 = vpop.f32.mrf.mxu0  ;;  %1387 = vmatmul.mubr.bf16.vlgmr.msra.gmra.mxu1 %v571_v39 }
  0xfc   : > { %v511_v45 = vadd.f32 %v1240_v25, %v510_v44  ;;  %v561_v46 = vmax.f32 %v519_v42, 0.0  ;;  %1474 = vmatpush3.bf16.msra.mxu1 %v1562_v19 }
  0xfd   : > { %v1364_v47 = vpop.f32.mrf.mxu0  ;;  %1467 = vmatprep.subr.bf16.mxu1 %v1563_v20 }
  0xfe   : > { %v559_v49 = vmax.f32 %v511_v45, 0.0  ;;  %v573_v53 = vpack.c.bf16 %v561_v46, %v560_v50  ;;  %v532_v57 = vadd.f32 %v1364_v47, %v1240_v25 }
  0xff   : > { %v523_v51 = vpop.f32.mrf.mxu0 }
 0x100   : > { %v572_v52 = vpack.c.bf16 %v559_v49, %v558_v48  ;;  %v524_v55 = vadd.f32 %v1240_v25, %v523_v51  ;;  %v564_v0 = vmax.f32 %v532_v57, 0.0  ;;  %1475 = vmatpush3.bf16.msra.mxu1 %v1563_v20 }
 0x101   : > { %v1365_v54 = vpop.f32.mrf.mxu0  ;;  %1468 = vmatprep.subr.bf16.mxu1 %v1564_v21 }
 0x102   : > { %v535_v56 = vadd.f32 %v1365_v54, %v1240_v25  ;;  %1390 = vmatprep.mubr.bf16.mxu1 %v572_v52  ;;  %v562_v62 = vmax.f32 %v524_v55, 0.0 }
 0x103   : > { %v526_v58 = vpop.f32.mrf.mxu0  ;;  %1391 = vmatmul.mubr.bf16.gmra.mxu1 %v573_v53 }
 0x104   : > { %v527_v59 = vadd.f32 %v1240_v25, %v526_v58  ;;  %v565_v60 = vmax.f32 %v535_v56, 0.0  ;;  %1476 = vmatpush3.bf16.msra.mxu1 %v1564_v21 }
 0x105   : > { %v1368_v61 = vpop.f32.mrf.mxu0  ;;  %1469 = vmatprep.subr.bf16.mxu1 %v1565_v22 }
 0x106   : > { %v563_v63 = vmax.f32 %v527_v59, 0.0  ;;  %v575_v3 = vpack.c.bf16 %v565_v60, %v564_v0  ;;  %v548_v7 = vadd.f32 %v1368_v61, %v1240_v25 }
 0x107   : > { %v539_v1 = vpop.f32.mrf.mxu0 }
 0x108   : > { %v574_v2 = vpack.c.bf16 %v563_v63, %v562_v62  ;;  %v540_v5 = vadd.f32 %v1240_v25, %v539_v1  ;;  %v568_v13 = vmax.f32 %v548_v7, 0.0  ;;  %1477 = vmatpush3.bf16.msra.mxu1 %v1565_v22 }
 0x109   : > { %v1369_v4 = vpop.f32.mrf.mxu0  ;;  %1470 = vmatprep.subr.bf16.mxu1 %v1863_v23 }
 0x10a   : > { %v551_v6 = vadd.f32 %v1369_v4, %v1240_v25  ;;  %1394 = vmatprep.mubr.bf16.mxu1 %v574_v2  ;;  %v566_v11 = vmax.f32 %v540_v5, 0.0 }
 0x10b   : > { %v542_v8 = vpop.f32.mrf.mxu0  ;;  %1395 = vmatmul.mubr.bf16.gmra.mxu1 %v575_v3 }
 0x10c   : > { %v543_v9 = vadd.f32 %v1240_v25, %v542_v8  ;;  %v569_v10 = vmax.f32 %v551_v6, 0.0  ;;  %1478 = vmatpush3.bf16.msra.mxu1 %v1863_v23 }
 0x10d   : > { %1471 = vmatprep.subr.bf16.mxu1 %v1567_v17 }
 0x10e   : > { %v567_v12 = vmax.f32 %v543_v9, 0.0  ;;  %v577_v15 = vpack.c.bf16 %v569_v10, %v568_v13 }
 0x110   : > { %v576_v14 = vpack.c.bf16 %v567_v12, %v566_v11  ;;  %1479 = vmatpush3.bf16.msra.mxu1 %v1567_v17 }
 0x111   : > { %1472 = vmatprep.subr.bf16.mxu1 %v1568_v18 }
 0x112   : > { %1398 = vmatprep.mubr.bf16.mxu1 %v576_v14 }
 0x113   : > { %1399 = vmatmul.mubr.bf16.gmra.mxu1 %v577_v15 }
 0x114   : > { %1480 = vmatpush3.bf16.msra.mxu1 %v1568_v18 }
 0x1bb   : > { %v1388_v24 = vpop.f32.mrf.mxu1 }
 0x1bc   : > { %v691_v30 = vadd.f32 %v1388_v24, %v1259_v26 }
 0x1bd   : > { %v682_v25 = vpop.f32.mrf.mxu1 }
 0x1be   : > { %v683_v28 = vadd.f32 %v1259_v26, %v682_v25  ;;  %v747_v37 = vmax.f32 %v691_v30, 0.0 }
 0x1bf   : > { %v1389_v27 = vpop.f32.mrf.mxu1 }
 0x1c0   : > { %v694_v29 = vadd.f32 %v1389_v27, %v1259_v26  ;;  %v745_v35 = vmax.f32 %v683_v28, 0.0 }
 0x1c1   : > { %v685_v31 = vpop.f32.mrf.mxu1 }
 0x1c2   : > { %v686_v32 = vadd.f32 %v1259_v26, %v685_v31  ;;  %v748_v33 = vmax.f32 %v694_v29, 0.0 }
 0x1c3   : > { %v1392_v34 = vpop.f32.mrf.mxu1 }
 0x1c4   : > { %v746_v36 = vmax.f32 %v686_v32, 0.0  ;;  %v762_v40 = vpack.c.bf16 %v748_v33, %v747_v37  ;;  %v707_v44 = vadd.f32 %v1392_v34, %v1259_v26 }
 0x1c5   : > { %v698_v38 = vpop.f32.mrf.mxu1 }
 0x1c6   : > { %v761_v39 = vpack.c.bf16 %v746_v36, %v745_v35  ;;  %v699_v42 = vadd.f32 %v1259_v26, %v698_v38  ;;  %v751_v51 = vmax.f32 %v707_v44, 0.0 }
 0x1c7   : > { %v1393_v41 = vpop.f32.mrf.mxu1 }
 0x1c8   : > { %v710_v43 = vadd.f32 %v1393_v41, %v1259_v26  ;;  %1418 = vmatprep.mubr.bf16.mxu0 %v761_v39  ;;  %v749_v49 = vmax.f32 %v699_v42, 0.0 }
 0x1c9   : > { %v701_v45 = vpop.f32.mrf.mxu1  ;;  %1419 = vmatmul.mubr.bf16.vlgmr.msra.gmra.mxu0 %v762_v40 }
 0x1ca   : > { %v702_v46 = vadd.f32 %v1259_v26, %v701_v45  ;;  %1435 = vmatpush3.bf16.msra.mxu0 %v1562_v19  ;;  %v752_v47 = vmax.f32 %v710_v43, 0.0  ;;  %v1569_v19 = vld [vmem:[#allocation2] sm:$0xff]  }
 0x1cb   : > { %v1396_v48 = vpop.f32.mrf.mxu1  ;;  %1436 = vmatprep.subr.bf16.mxu0 %v1563_v20  ;;  %1473 = vmatprep.subr.bf16.mxu1 %v1569_v19 }
 0x1cc   : > { %v750_v50 = vmax.f32 %v702_v46, 0.0  ;;  %v764_v54 = vpack.c.bf16 %v752_v47, %v751_v51  ;;  %v723_v58 = vadd.f32 %v1396_v48, %v1259_v26  ;;  %1481 = vmatpush3.bf16.msra.mxu1 %v1569_v19 }
 0x1cd   : > { %v714_v52 = vpop.f32.mrf.mxu1 }
 0x1ce   : > { %v763_v53 = vpack.c.bf16 %v750_v50, %v749_v49  ;;  %1437 = vmatpush3.bf16.msra.mxu0 %v1563_v20  ;;  %v715_v56 = vadd.f32 %v1259_v26, %v714_v52  ;;  %v755_v1 = vmax.f32 %v723_v58, 0.0 }
 0x1cf   : > { %v1397_v55 = vpop.f32.mrf.mxu1  ;;  %1438 = vmatprep.subr.bf16.mxu0 %v1564_v21 }
 0x1d0   : > { %v726_v57 = vadd.f32 %v1397_v55, %v1259_v26  ;;  %1422 = vmatprep.mubr.bf16.mxu0 %v763_v53  ;;  %v753_v63 = vmax.f32 %v715_v56, 0.0 }
 0x1d1   : > { %v717_v59 = vpop.f32.mrf.mxu1  ;;  %1423 = vmatmul.mubr.bf16.gmra.mxu0 %v764_v54 }
 0x1d2   : > { %v718_v60 = vadd.f32 %v1259_v26, %v717_v59  ;;  %1439 = vmatpush3.bf16.msra.mxu0 %v1564_v21  ;;  %v756_v61 = vmax.f32 %v726_v57, 0.0 }
 0x1d3   : > { %v1400_v62 = vpop.f32.mrf.mxu1  ;;  %1440 = vmatprep.subr.bf16.mxu0 %v1565_v22 }
 0x1d4   : > { %v754_v0 = vmax.f32 %v718_v60, 0.0  ;;  %v766_v4 = vpack.c.bf16 %v756_v61, %v755_v1  ;;  %v739_v8 = vadd.f32 %v1400_v62, %v1259_v26 }
 0x1d5   : > { %v730_v2 = vpop.f32.mrf.mxu1 }
 0x1d6   : > { %v765_v3 = vpack.c.bf16 %v754_v0, %v753_v63  ;;  %1441 = vmatpush3.bf16.msra.mxu0 %v1565_v22  ;;  %v731_v6 = vadd.f32 %v1259_v26, %v730_v2  ;;  %v759_v14 = vmax.f32 %v739_v8, 0.0  ;;  %v1268_v22 = vld [vmem:[%s1956_s6] ss:$0 sm:$0xff] }
 0x1d7   : > { %v1401_v5 = vpop.f32.mrf.mxu1  ;;  %1442 = vmatprep.subr.bf16.mxu0 %v1863_v23 }
 0x1d8   : > { %v742_v7 = vadd.f32 %v1401_v5, %v1259_v26  ;;  %1426 = vmatprep.mubr.bf16.mxu0 %v765_v3  ;;  %v757_v12 = vmax.f32 %v731_v6, 0.0 }
 0x1d9   : > { %v733_v9 = vpop.f32.mrf.mxu1  ;;  %1427 = vmatmul.mubr.bf16.gmra.mxu0 %v766_v4 }
 0x1da   : > { %v734_v10 = vadd.f32 %v1259_v26, %v733_v9  ;;  %1443 = vmatpush3.bf16.msra.mxu0 %v1863_v23  ;;  %v760_v11 = vmax.f32 %v742_v7, 0.0 }
 0x1db   : > { %1444 = vmatprep.subr.bf16.mxu0 %v1567_v17 }
 0x1dc   : > { %v758_v13 = vmax.f32 %v734_v10, 0.0  ;;  %v768_v16 = vpack.c.bf16 %v760_v11, %v759_v14 }
 0x1de   : > { %v767_v15 = vpack.c.bf16 %v758_v13, %v757_v12  ;;  %1445 = vmatpush3.bf16.msra.mxu0 %v1567_v17  ;;  %v1277_v13 = vld [vmem:[%s1958_s8] ss:$0 sm:$0xff] }
 0x1df   : > { %1446 = vmatprep.subr.bf16.mxu0 %v1568_v18 }
 0x1e0   : > { %1430 = vmatprep.mubr.bf16.mxu0 %v767_v15 }
 0x1e1   : > { %1431 = vmatmul.mubr.bf16.gmra.mxu0 %v768_v16 }
 0x1e2   : > { %1447 = vmatpush3.bf16.msra.mxu0 %v1568_v18 }
 0x1e3   : > { %1448 = vmatprep.subr.bf16.mxu0 %v1569_v19 }
 0x1e6   : > { %1449 = vmatpush3.bf16.msra.mxu0 %v1569_v19 }
 0x289   : > { %v1420_v20 = vpop.f32.mrf.mxu0 }
 0x28a   : > { %v882_v26 = vadd.f32 %v1420_v20, %v1268_v22 }
 0x28b   : > { %v873_v21 = vpop.f32.mrf.mxu0 }
 0x28c   : > { %v874_v24 = vadd.f32 %v1268_v22, %v873_v21  ;;  %v938_v33 = vmax.f32 %v882_v26, 0.0 }
 0x28d   : > { %v1421_v23 = vpop.f32.mrf.mxu0 }
 0x28e   : > { %v885_v25 = vadd.f32 %v1421_v23, %v1268_v22  ;;  %v936_v31 = vmax.f32 %v874_v24, 0.0 }
 0x28f   : > { %v876_v27 = vpop.f32.mrf.mxu0 }
 0x290   : > { %v877_v28 = vadd.f32 %v1268_v22, %v876_v27  ;;  %v939_v29 = vmax.f32 %v885_v25, 0.0 }
 0x291   : > { %v1424_v30 = vpop.f32.mrf.mxu0 }
 0x292   : > { %v937_v32 = vmax.f32 %v877_v28, 0.0  ;;  %v953_v36 = vpack.c.bf16 %v939_v29, %v938_v33  ;;  %v898_v40 = vadd.f32 %v1424_v30, %v1268_v22 }
 0x293   : > { %v889_v34 = vpop.f32.mrf.mxu0 }
 0x294   : > { %v952_v35 = vpack.c.bf16 %v937_v32, %v936_v31  ;;  %v890_v38 = vadd.f32 %v1268_v22, %v889_v34  ;;  %v942_v47 = vmax.f32 %v898_v40, 0.0 }
 0x295   : > { %v1425_v37 = vpop.f32.mrf.mxu0 }
 0x296   : > { %v901_v39 = vadd.f32 %v1425_v37, %v1268_v22  ;;  %1450 = vmatprep.mubr.bf16.mxu0 %v952_v35  ;;  %v940_v45 = vmax.f32 %v890_v38, 0.0 }
 0x297   : > { %v892_v41 = vpop.f32.mrf.mxu0  ;;  %1451 = vmatmul.mubr.bf16.vlgmr.msra.gmra.mxu0 %v953_v36 }
 0x298   : > { %v893_v42 = vadd.f32 %v1268_v22, %v892_v41  ;;  %v943_v43 = vmax.f32 %v901_v39, 0.0 }
 0x299   : > { %v1428_v44 = vpop.f32.mrf.mxu0 }
 0x29a   : > { %v941_v46 = vmax.f32 %v893_v42, 0.0  ;;  %v955_v50 = vpack.c.bf16 %v943_v43, %v942_v47  ;;  %v914_v54 = vadd.f32 %v1428_v44, %v1268_v22 }
 0x29b   : > { %v905_v48 = vpop.f32.mrf.mxu0 }
 0x29c   : > { %v954_v49 = vpack.c.bf16 %v941_v46, %v940_v45  ;;  %v906_v52 = vadd.f32 %v1268_v22, %v905_v48  ;;  %v946_v61 = vmax.f32 %v914_v54, 0.0 }
 0x29d   : > { %v1429_v51 = vpop.f32.mrf.mxu0 }
 0x29e   : > { %v917_v53 = vadd.f32 %v1429_v51, %v1268_v22  ;;  %1454 = vmatprep.mubr.bf16.mxu1 %v954_v49  ;;  %v944_v59 = vmax.f32 %v906_v52, 0.0 }
 0x29f   : > { %v908_v55 = vpop.f32.mrf.mxu0  ;;  %1455 = vmatmul.mubr.bf16.vlgmr.msra.gmra.mxu1 %v955_v50 }
 0x2a0   : > { %v909_v56 = vadd.f32 %v1268_v22, %v908_v55  ;;  %v947_v57 = vmax.f32 %v917_v53, 0.0 }
 0x2a1   : > { %v1432_v58 = vpop.f32.mrf.mxu0 }
 0x2a2   : > { %v945_v60 = vmax.f32 %v909_v56, 0.0  ;;  %v957_v0 = vpack.c.bf16 %v947_v57, %v946_v61  ;;  %v930_v4 = vadd.f32 %v1432_v58, %v1268_v22 }
 0x2a3   : > { %v921_v62 = vpop.f32.mrf.mxu0 }
 0x2a4   : > { %v956_v63 = vpack.c.bf16 %v945_v60, %v944_v59  ;;  %v922_v2 = vadd.f32 %v1268_v22, %v921_v62  ;;  %v950_v10 = vmax.f32 %v930_v4, 0.0 }
 0x2a5   : > { %v1433_v1 = vpop.f32.mrf.mxu0 }
 0x2a6   : > { %v933_v3 = vadd.f32 %v1433_v1, %v1268_v22  ;;  %1458 = vmatprep.mubr.bf16.mxu1 %v956_v63  ;;  %v948_v8 = vmax.f32 %v922_v2, 0.0 }
 0x2a7   : > { %v924_v5 = vpop.f32.mrf.mxu0  ;;  %1459 = vmatmul.mubr.bf16.gmra.mxu1 %v957_v0 }
 0x2a8   : > { %v925_v6 = vadd.f32 %v1268_v22, %v924_v5  ;;  %v951_v7 = vmax.f32 %v933_v3, 0.0 }
 0x2aa   : > { %v949_v9 = vmax.f32 %v925_v6, 0.0  ;;  %v959_v12 = vpack.c.bf16 %v951_v7, %v950_v10 }
 0x2ac   : > { %v958_v11 = vpack.c.bf16 %v949_v9, %v948_v8 }
 0x2ae   : > { %1462 = vmatprep.mubr.bf16.mxu1 %v958_v11 }
 0x2af   : > { %1463 = vmatmul.mubr.bf16.gmra.mxu1 %v959_v12 }
 0x357   : > { %v1452_v14 = vpop.f32.mrf.mxu0 }
 0x358   : > { %v1073_v15 = vadd.f32 %v1452_v14, %v1277_v13 }
 0x359   : > { %v1064_v16 = vpop.f32.mrf.mxu0 }
 0x35a   : > { %1129 = vst [vmem:[%s1881_s17 + $0x10] sm:$0xff] %v1073_v15  ;;  %v1065_v17 = vadd.f32 %v1277_v13, %v1064_v16 }
 0x35b   : > { %v1453_v18 = vpop.f32.mrf.mxu0 }
 0x35c   : > { %1127 = vst [vmem:[%s1881_s17] sm:$0xff] %v1065_v17  ;;  %v1076_v19 = vadd.f32 %v1453_v18, %v1277_v13 }
 0x35d   : > { %v1067_v20 = vpop.f32.mrf.mxu0 }
 0x35e   : > { %1130 = vst [vmem:[%s1881_s17 + $0x18] sm:$0xff] %v1076_v19  ;;  %v1068_v21 = vadd.f32 %v1277_v13, %v1067_v20 }
 0x35f   : > { %v1456_v22 = vpop.f32.mrf.mxu1 }
 0x360   : > { %1128 = vst [vmem:[%s1881_s17 + $0x8] sm:$0xff] %v1068_v21  ;;  %v1089_v23 = vadd.f32 %v1456_v22, %v1277_v13 }
 0x361   : > { %v1080_v24 = vpop.f32.mrf.mxu1 }
 0x362   : > { %1133 = vst [vmem:[%s1881_s17 + $0x30] sm:$0xff] %v1089_v23  ;;  %v1081_v25 = vadd.f32 %v1277_v13, %v1080_v24 }
 0x363   : > { %v1457_v26 = vpop.f32.mrf.mxu1 }
 0x364   : > { %1131 = vst [vmem:[%s1881_s17 + $0x20] sm:$0xff] %v1081_v25  ;;  %v1092_v27 = vadd.f32 %v1457_v26, %v1277_v13 }
 0x365   : > { %v1083_v28 = vpop.f32.mrf.mxu1 }
 0x366   : > { %1134 = vst [vmem:[%s1881_s17 + $0x38] sm:$0xff] %v1092_v27  ;;  %v1084_v29 = vadd.f32 %v1277_v13, %v1083_v28 }
 0x367   : > { %v1460_v30 = vpop.f32.mrf.mxu1 }
 0x368   : > { %1132 = vst [vmem:[%s1881_s17 + $0x28] sm:$0xff] %v1084_v29  ;;  %v1105_v31 = vadd.f32 %v1460_v30, %v1277_v13 }
 0x369   : > { %v1096_v32 = vpop.f32.mrf.mxu1 }
 0x36a   : > { %1137 = vst [vmem:[%s1881_s17 + $0x50] sm:$0xff] %v1105_v31  ;;  %v1097_v33 = vadd.f32 %v1277_v13, %v1096_v32 }
 0x36b   : > { %v1461_v34 = vpop.f32.mrf.mxu1 }
 0x36c   : > { %1135 = vst [vmem:[%s1881_s17 + $0x40] sm:$0xff] %v1097_v33  ;;  %v1108_v35 = vadd.f32 %v1461_v34, %v1277_v13 }
 0x36d   : > { %v1099_v36 = vpop.f32.mrf.mxu1 }
 0x36e   : > { %1138 = vst [vmem:[%s1881_s17 + $0x58] sm:$0xff] %v1108_v35  ;;  %v1100_v37 = vadd.f32 %v1277_v13, %v1099_v36 }
 0x36f   : > { %v1464_v38 = vpop.f32.mrf.mxu1 }
 0x370   : > { %1136 = vst [vmem:[%s1881_s17 + $0x48] sm:$0xff] %v1100_v37  ;;  %v1121_v39 = vadd.f32 %v1464_v38, %v1277_v13 }
 0x371   : > { %v1112_v40 = vpop.f32.mrf.mxu1 }
 0x372   : > { %1141 = vst [vmem:[%s1881_s17 + $0x70] sm:$0xff] %v1121_v39  ;;  %v1113_v41 = vadd.f32 %v1277_v13, %v1112_v40 }
 0x373   : > { %v1465_v42 = vpop.f32.mrf.mxu1 }
 0x374   : > { %1139 = vst [vmem:[%s1881_s17 + $0x60] sm:$0xff] %v1113_v41  ;;  %v1124_v43 = vadd.f32 %v1465_v42, %v1277_v13 }
 0x375   : > { %v1115_v44 = vpop.f32.mrf.mxu1 }
 0x376   : > { %1142 = vst [vmem:[%s1881_s17 + $0x78] sm:$0xff] %v1124_v43  ;;  %v1116_v45 = vadd.f32 %v1277_v13, %v1115_v44 }
 0x378   : > { %1140 = vst [vmem:[%s1881_s17 + $0x68] sm:$0xff] %v1116_v45 }
 0x379   : > { %1609 = shalt.err (!%p1606_p0)
}
 0x37a   : > { %s1610_s29 = scalar_lea.hbm %s1902_s26, 2048  ;;  %s1614_s23 = scalar_lea.hbm %s1959_s9, 4096 }
 0x37b   : > { %p1611_p1 = scmp.ne.s32.totalorder %s1902_s26, %s1610_s29  ;;  %p1615_p4 = scmp.lt.s32.totalorder %s1902_s26, %s1959_s9 }
 0x37c   : > { %p1616_p7 = scmp.lt.s32.totalorder %s1614_s23, %s1610_s29 }
 0x37d   : > { %p1612_p2 = pnand %p1611_p1, %p1756_p5 }
 0x37e   : > { %p1617_p8 = por %p1616_p7, %p1615_p4 }
 0x37f   : > { %p1613_p3 = pneg %p1612_p2 }
 0x381   : > { %p1618_p6 = pnand %p1617_p8, %p1613_p3 }
 0x383   : > { %1621 = shalt.err (!%p1618_p6)
}
 0x384   : > { %s1666_s27 = smov 128   ;;  %s1667_s28 = smov 8  }
 0x385   : > { %1486 = dma.vmem_to_hbm [thread:$0]  (%p1756_p5), %s1904_s24, 2048, %s1902_s26, %s1910_s13, %s1666_s27, %s1666_s27, %s1667_s28  }
 0x386 PF: > { %p1498_p9 = scmp.ge.s32.totalorder %s1660_s12, 2  ;;  %s1172_s14 = sand.u32 1, %s1648_s30  }
 0x387   : > { %p1963_p10 = scmp.ne.s32.totalorder %s1961_s20, 0  ;;  %s1173_s22 = scalar_lea.sflag [#allocation4], %s1172_s14 }
 0x389   : > { %p1493_p11 = pnand %p1498_p9, %p1963_p10 }
 0x38b   : > { %p1494_p12 = pneg %p1493_p11 }
 0x38d   : > { %1643 = dma.done.wait (%p1494_p12), %s1173_s22, 2048  }
 0x38e   : > { %1645 = vsyncadd (%p1494_p12), %s1173_s22, 4294965248  ;;  %p20_p13 = scmp.ge.s32.totalorder %s1743_s15, 4   ;;  %s1964_s30 = smov %s1652_s10 }
 0x38f   : > { %s1965_s10 = smov %s1656_s11  ;;  %s1966_s11 = smov %s1754_s18 }
 0x390   : > { %s1967_s12 = smov %s1743_s15  ;;  %22 = sbr.rel (!%p20_p13) target bundleno = 4 (0x4), region = 96 }
 0x395   :  { %1178 = vsyncpa [#allocation3], 1 }
 0x396   :  { %1180 = vsyncpa [#allocation3 + $0x1], 1 }
 0x397   :  { %1181 = vsyncpa [#allocation4], 1 }
 0x398   :  { %1183 = vsyncpa [#allocation4 + $0x1], 1 }

</bundles_post_ra>
